<compile_context>
chip_gen: v7x
topology: tpu7x:2x2x1
jax: 0.10.0
libtpu: 0.0.40
codegen_flags: <defaults>
</compile_context>

<pallas_src>
import jax
import jax.numpy as jnp
from jax.experimental import pallas as pl
from jax.experimental.pallas import tpu as pltpu

NCROPS = 2
MOMENTUM = 0.999999
ONE_MINUS_MOMENTUM = 1.0 - MOMENTUM   # folded in double; matches torch's (1 - self.momentum)
CLAMP_MIN = 1e-5
CLAMP_MAX = 1e5

_HIGHEST = jax.lax.Precision.HIGHEST  # keep the one-hot f32 matmuls exact (no bf16 demotion)


def surrogate_loss_kernel(labels_col_ref, labels_row_ref, x_ref, surr_ref,
                          loss_ref, surr_out_ref):
    """labels_col_ref: VMEM (B,1) i32; labels_row_ref: VMEM (1,B) i32; x_ref: VMEM (2B,D) f32;
    surr_ref: VMEM (C,D) f32; loss_ref: SMEM (1,1) f32; surr_out_ref: VMEM (C,D) f32."""
    B = labels_col_ref.shape[0]
    C = surr_ref.shape[0]
    m = jnp.float32(MOMENTUM)
    omm = jnp.float32(ONE_MINUS_MOMENTUM)

    labels_col = labels_col_ref[...]                 # (B, 1) int32
    labels_row = labels_row_ref[...]                 # (1, B) int32
    surr = surr_ref[...]                             # (C, D) f32
    x0 = x_ref[:B, :]                                # (B, D) crop 0
    x1 = x_ref[B:, :]                                # (B, D) crop 1

    # --- one-hot label matrices, built in both orientations so no transposes are needed ---
    class_bc = jax.lax.broadcasted_iota(jnp.int32, (B, C), 1)
    one_hot_bc = (labels_col == class_bc).astype(jnp.float32)           # (B, C) gather matrix
    class_cb = jax.lax.broadcasted_iota(jnp.int32, (C, B), 0)
    one_hot_cb = (class_cb == labels_row).astype(jnp.float32)           # (C, B) scatter matrix

    # --- duplicate-label guard: torch advanced-indexing assignment is last-write-wins ---
    eq = (labels_col == labels_row).astype(jnp.float32)                 # (B, B) label match
    row_i = jax.lax.broadcasted_iota(jnp.int32, (B, B), 0)
    col_i = jax.lax.broadcasted_iota(jnp.int32, (B, B), 1)
    later = jnp.where(row_i > col_i, eq, jnp.float32(0.0))              # same label at a later row
    is_last_row = (jnp.sum(later, axis=0, keepdims=True) == 0.0).astype(jnp.float32)  # (1, B)
    one_hot_last_cb = one_hot_cb * is_last_row                          # (C, B): keep last occurrence only
    touched = jnp.sum(one_hot_last_cb, axis=1, keepdims=True) > 0.5     # (C, 1): class appears in labels
    # select_last[b, b'] = 1 iff b' is the last occurrence of labels[b]
    select_last = eq * is_last_row                                      # (B, B)

    # --- crop 0: gather via MXU, distance, EMA rows kept in registers ---
    g0 = jnp.dot(one_hot_bc, surr, preferred_element_type=jnp.float32, precision=_HIGHEST)  # (B, D)
    d0 = x0 - g0
    dist0 = jnp.clip(jnp.sum(d0 * d0, axis=-1, keepdims=True), CLAMP_MIN, CLAMP_MAX)        # (B, 1)
    ema0 = g0 * m + x0 * omm

    # --- crop 1: the table it would gather (post crop-0 scatter) is exactly crop-0's EMA at the
    #     last duplicate occurrence, so select straight from ema0 (no full-table scatter/re-gather) ---
    g1 = jnp.dot(select_last, ema0, preferred_element_type=jnp.float32, precision=_HIGHEST)  # (B, D)
    d1 = x1 - g1
    dist1 = jnp.clip(jnp.sum(d1 * d1, axis=-1, keepdims=True), CLAMP_MIN, CLAMP_MAX)         # (B, 1)
    ema1 = g1 * m + x1 * omm

    # --- loss: per-crop batch mean, summed, then /1000/2 ---
    total = (jnp.sum(dist0) + jnp.sum(dist1)) / jnp.float32(B)
    loss_ref[0, 0] = total / jnp.float32(1000.0) / jnp.float32(2.0)

    # --- single full-table write: touched rows get crop-1 EMA (last occurrence), rest unchanged ---
    scat1 = jnp.dot(one_hot_last_cb, ema1, preferred_element_type=jnp.float32, precision=_HIGHEST)
    surr_out_ref[...] = jnp.where(touched, scat1, surr)


def surrogate_loss(x, labels, surrogates):
    """x: (NCROPS*B, D) f32, labels: (B,) int, surrogates: (C, D) f32.
    Returns (scalar loss, updated surrogate table)."""
    nB, D = x.shape
    B = labels.shape[0]
    C, D2 = surrogates.shape
    assert D2 == D
    assert nB == NCROPS * B, "features.size(0) is not equal to ncrops * labels.size(0)"

    labels = labels.astype(jnp.int32)
    labels_col = labels.reshape(B, 1)
    labels_row = labels.reshape(1, B)

    loss, surr_new = pl.pallas_call(
        surrogate_loss_kernel,
        out_shape=(
            jax.ShapeDtypeStruct((1, 1), jnp.float32),
            jax.ShapeDtypeStruct((C, D), jnp.float32),
        ),
        grid=(1,),
        in_specs=[
            pl.BlockSpec((B, 1), lambda i: (0, 0)),    # labels (column form)
            pl.BlockSpec((1, B), lambda i: (0, 0)),    # labels (row form)
            pl.BlockSpec((nB, D), lambda i: (0, 0)),   # features, whole array
            pl.BlockSpec((C, D), lambda i: (0, 0)),    # surrogate table, whole array
        ],
        out_specs=(
            pl.BlockSpec(memory_space=pltpu.MemorySpace.SMEM),  # scalar loss
            pl.BlockSpec((C, D), lambda i: (0, 0)),             # updated table
        ),
        # Alias surrogates (input 3) with the updated table (output 1): avoids a duplicate HBM
        # buffer when the caller donates the table; XLA inserts a defensive copy otherwise.
        input_output_aliases={3: 1},
        compiler_params=pltpu.CompilerParams(dimension_semantics=("arbitrary",)),
    )(labels_col, labels_row, x, surrogates)
    return loss[0, 0], surr_new


def surrogate_loss_reference(x, labels, surrogates):
    """Pure-JAX reference of the PyTorch forward (non-KL path), incl. last-write-wins scatter."""
    B = labels.shape[0]
    surr = surrogates
    total = jnp.float32(0.0)
    for i in range(2):
        xi = x[i * B:(i + 1) * B]
        s = surr[labels]
        dist = jnp.sum((xi - s) ** 2, axis=-1)
        total = total + jnp.mean(jnp.clip(dist, CLAMP_MIN, CLAMP_MAX))
        ema = s * MOMENTUM + xi * ONE_MINUS_MOMENTUM
        for b in range(B):  # sequential writes == torch last-write-wins on duplicate labels
            surr = surr.at[labels[b]].set(ema[b])
    return total / 1000.0 / 2.0, surr


if __name__ == "__main__":
    # Small shapes consistent with the module: batch=8 per crop, ncrops=2,
    # num_classes=16, feat_dim=256.
    B, C, D = 8, 16, 256

    key = jax.random.PRNGKey(0)
    kx, ks, kl = jax.random.split(key, 3)

    x = jax.random.normal(kx, (NCROPS * B, D), dtype=jnp.float32)
    surrogates = jax.random.normal(ks, (C, D), dtype=jnp.float32)   # module uses torch.randn(C, D)

    labels_unique = jax.random.permutation(kl, C)[:B].astype(jnp.int32)     # typical: distinct labels
    labels_dup = jnp.array([3, 7, 3, 0, 12, 7, 3, 5], dtype=jnp.int32)      # exercises last-write-wins

    for labels in (labels_unique, labels_dup):
        ref_loss, ref_surr = surrogate_loss_reference(x, labels, surrogates)
        loss, surr_new = surrogate_loss(x, labels, surrogates)
        loss, surr_new = jax.block_until_ready((loss, surr_new))
        assert jnp.allclose(loss, ref_loss, rtol=1e-5, atol=1e-5), (float(loss), float(ref_loss))
        assert jnp.allclose(surr_new, ref_surr, rtol=1e-5, atol=1e-5), \
            float(jnp.max(jnp.abs(surr_new - ref_surr)))

    print("KERNEL_OK")
</pallas_src>

<mosaic_0001>
module attributes {stable_mosaic.version = 11 : i64} {
  func.func @surrogate_loss_kernel(%arg0: i32, %arg1: memref<8x1xi32, #tpu.memory_space<vmem>>, %arg2: memref<1x8xi32, #tpu.memory_space<vmem>>, %arg3: memref<16x256xf32, #tpu.memory_space<vmem>>, %arg4: memref<16x256xf32, #tpu.memory_space<vmem>>, %arg5: memref<1x1xf32, #tpu.memory_space<smem>>, %arg6: memref<16x256xf32, #tpu.memory_space<vmem>>) attributes {dimension_semantics = [#tpu.dimension_semantics<arbitrary>], iteration_bounds = array<i64: 1>, scalar_prefetch = 0 : i64, scratch_operands = 0 : i64, tpu.core_type = #tpu.core_type<tc>, window_params = [{pipeline_mode = #tpu.pipeline_mode<synchronous>, transform_indices = @transform_0, window_bounds = array<i64: 8, 1>}, {pipeline_mode = #tpu.pipeline_mode<synchronous>, transform_indices = @transform_1, window_bounds = array<i64: 1, 8>}, {pipeline_mode = #tpu.pipeline_mode<synchronous>, transform_indices = @transform_2, window_bounds = array<i64: 16, 256>}, {pipeline_mode = #tpu.pipeline_mode<synchronous>, transform_indices = @transform_3, window_bounds = array<i64: 16, 256>}, {transform_indices = @transform_4, window_bounds = array<i64: 1, 1>}, {pipeline_mode = #tpu.pipeline_mode<synchronous>, transform_indices = @transform_5, window_bounds = array<i64: 16, 256>}]} {
    %c0 = arith.constant 0 : index
    %c0_0 = arith.constant 0 : index
    %0 = vector.load %arg1[%c0, %c0_0] : memref<8x1xi32, #tpu.memory_space<vmem>>, vector<8x1xi32>
    %c0_1 = arith.constant 0 : index
    %c0_2 = arith.constant 0 : index
    %1 = vector.load %arg2[%c0_1, %c0_2] : memref<1x8xi32, #tpu.memory_space<vmem>>, vector<1x8xi32>
    %c0_3 = arith.constant 0 : index
    %c0_4 = arith.constant 0 : index
    %2 = vector.load %arg4[%c0_3, %c0_4] : memref<16x256xf32, #tpu.memory_space<vmem>>, vector<16x256xf32>
    %c0_5 = arith.constant 0 : index
    %c0_6 = arith.constant 0 : index
    %3 = vector.load %arg3[%c0_5, %c0_6] : memref<16x256xf32, #tpu.memory_space<vmem>>, vector<8x256xf32>
    %c8 = arith.constant 8 : index
    %c0_7 = arith.constant 0 : index
    %4 = vector.load %arg3[%c8, %c0_7] : memref<16x256xf32, #tpu.memory_space<vmem>>, vector<8x256xf32>
    %5 = tpu.iota {dimensions = array<i32: 1>} : vector<8x16xi32>
    %6 = vector.broadcast %0 : vector<8x1xi32> to vector<8x16xi32>
    %7 = arith.cmpi eq, %6, %5 : vector<8x16xi32>
    %8 = arith.extui %7 : vector<8x16xi1> to vector<8x16xi32>
    %9 = arith.sitofp %8 : vector<8x16xi32> to vector<8x16xf32>
    %10 = tpu.iota {dimensions = array<i32: 0>} : vector<16x8xi32>
    %11 = vector.broadcast %1 : vector<1x8xi32> to vector<16x8xi32>
    %12 = arith.cmpi eq, %10, %11 : vector<16x8xi32>
    %13 = arith.extui %12 : vector<16x8xi1> to vector<16x8xi32>
    %14 = arith.sitofp %13 : vector<16x8xi32> to vector<16x8xf32>
    %15 = vector.broadcast %0 : vector<8x1xi32> to vector<8x8xi32>
    %16 = vector.broadcast %1 : vector<1x8xi32> to vector<8x8xi32>
    %17 = arith.cmpi eq, %15, %16 : vector<8x8xi32>
    %18 = arith.extui %17 : vector<8x8xi1> to vector<8x8xi32>
    %19 = arith.sitofp %18 : vector<8x8xi32> to vector<8x8xf32>
    %20 = tpu.iota {dimensions = array<i32: 0>} : vector<8x8xi32>
    %21 = tpu.iota {dimensions = array<i32: 1>} : vector<8x8xi32>
    %22 = arith.cmpi sgt, %20, %21 : vector<8x8xi32>
    %cst = arith.constant 0.000000e+00 : f32
    %23 = vector.broadcast %cst : f32 to vector<8x8xf32>
    %24 = arith.select %22, %19, %23 : vector<8x8xi1>, vector<8x8xf32>
    %cst_8 = arith.constant dense<0.000000e+00> : vector<8xf32>
    %25 = vector.multi_reduction <add>, %24, %cst_8 [0] : vector<8x8xf32> to vector<8xf32>
    %26 = vector.shape_cast %25 : vector<8xf32> to vector<1x8xf32>
    %cst_9 = arith.constant 0.000000e+00 : f32
    %27 = vector.broadcast %cst_9 : f32 to vector<1x8xf32>
    %28 = arith.cmpf oeq, %26, %27 : vector<1x8xf32>
    %29 = arith.extui %28 : vector<1x8xi1> to vector<1x8xi32>
    %30 = arith.sitofp %29 : vector<1x8xi32> to vector<1x8xf32>
    %31 = vector.broadcast %30 : vector<1x8xf32> to vector<16x8xf32>
    %32 = arith.mulf %14, %31 : vector<16x8xf32>
    %cst_10 = arith.constant dense<0.000000e+00> : vector<16xf32>
    %33 = vector.multi_reduction <add>, %32, %cst_10 [1] : vector<16x8xf32> to vector<16xf32>
    %34 = vector.shape_cast %33 : vector<16xf32> to vector<16x1xf32>
    %cst_11 = arith.constant 5.000000e-01 : f32
    %35 = vector.broadcast %cst_11 : f32 to vector<16x1xf32>
    %36 = arith.cmpf ogt, %34, %35 : vector<16x1xf32>
    %37 = vector.broadcast %30 : vector<1x8xf32> to vector<8x8xf32>
    %38 = arith.mulf %19, %37 : vector<8x8xf32>
    %cst_12 = arith.constant dense<0.000000e+00> : vector<8x256xf32>
    %39 = tpu.matmul %9, %2, %cst_12 {dimension_numbers = #tpu.dot_dimension_numbers<[1], [0], [0], [1], [0, 0, 1, 1], [], []>, precision = #tpu.contract_precision<fp32>} : vector<8x16xf32>, vector<16x256xf32>, vector<8x256xf32> -> vector<8x256xf32>
    %40 = arith.subf %3, %39 : vector<8x256xf32>
    %41 = arith.mulf %40, %40 : vector<8x256xf32>
    %cst_13 = arith.constant dense<0.000000e+00> : vector<8xf32>
    %42 = vector.multi_reduction <add>, %41, %cst_13 [1] : vector<8x256xf32> to vector<8xf32>
    %43 = vector.shape_cast %42 : vector<8xf32> to vector<8x1xf32>
    %cst_14 = arith.constant 9.99999974E-6 : f32
    %cst_15 = arith.constant 1.000000e+05 : f32
    %44 = vector.broadcast %cst_14 : f32 to vector<8x1xf32>
    %45 = arith.maximumf %44, %43 : vector<8x1xf32>
    %46 = vector.broadcast %cst_15 : f32 to vector<8x1xf32>
    %47 = arith.minimumf %46, %45 : vector<8x1xf32>
    %cst_16 = arith.constant 0.999998986 : f32
    %48 = vector.broadcast %cst_16 : f32 to vector<8x256xf32>
    %49 = arith.mulf %39, %48 : vector<8x256xf32>
    %cst_17 = arith.constant 9.99999997E-7 : f32
    %50 = vector.broadcast %cst_17 : f32 to vector<8x256xf32>
    %51 = arith.mulf %3, %50 : vector<8x256xf32>
    %52 = arith.addf %49, %51 : vector<8x256xf32>
    %cst_18 = arith.constant dense<0.000000e+00> : vector<8x256xf32>
    %53 = tpu.matmul %38, %52, %cst_18 {dimension_numbers = #tpu.dot_dimension_numbers<[1], [0], [0], [1], [0, 0, 1, 1], [], []>, precision = #tpu.contract_precision<fp32>} : vector<8x8xf32>, vector<8x256xf32>, vector<8x256xf32> -> vector<8x256xf32>
    %54 = arith.subf %4, %53 : vector<8x256xf32>
    %55 = arith.mulf %54, %54 : vector<8x256xf32>
    %cst_19 = arith.constant dense<0.000000e+00> : vector<8xf32>
    %56 = vector.multi_reduction <add>, %55, %cst_19 [1] : vector<8x256xf32> to vector<8xf32>
    %57 = vector.shape_cast %56 : vector<8xf32> to vector<8x1xf32>
    %cst_20 = arith.constant 9.99999974E-6 : f32
    %cst_21 = arith.constant 1.000000e+05 : f32
    %58 = vector.broadcast %cst_20 : f32 to vector<8x1xf32>
    %59 = arith.maximumf %58, %57 : vector<8x1xf32>
    %60 = vector.broadcast %cst_21 : f32 to vector<8x1xf32>
    %61 = arith.minimumf %60, %59 : vector<8x1xf32>
    %cst_22 = arith.constant 0.999998986 : f32
    %62 = vector.broadcast %cst_22 : f32 to vector<8x256xf32>
    %63 = arith.mulf %53, %62 : vector<8x256xf32>
    %cst_23 = arith.constant 9.99999997E-7 : f32
    %64 = vector.broadcast %cst_23 : f32 to vector<8x256xf32>
    %65 = arith.mulf %4, %64 : vector<8x256xf32>
    %66 = arith.addf %63, %65 : vector<8x256xf32>
    %67 = vector.shape_cast %47 : vector<8x1xf32> to vector<1x8x1xf32>
    %cst_24 = arith.constant dense<0.000000e+00> : vector<1xf32>
    %68 = vector.multi_reduction <add>, %67, %cst_24 [1, 2] : vector<1x8x1xf32> to vector<1xf32>
    %69 = vector.shape_cast %68 : vector<1xf32> to vector<1x1x1xf32>
    %70 = vector.extract %69[0, 0, 0] : f32 from vector<1x1x1xf32>
    %71 = vector.shape_cast %61 : vector<8x1xf32> to vector<1x8x1xf32>
    %cst_25 = arith.constant dense<0.000000e+00> : vector<1xf32>
    %72 = vector.multi_reduction <add>, %71, %cst_25 [1, 2] : vector<1x8x1xf32> to vector<1xf32>
    %73 = vector.shape_cast %72 : vector<1xf32> to vector<1x1x1xf32>
    %74 = vector.extract %73[0, 0, 0] : f32 from vector<1x1x1xf32>
    %75 = arith.addf %70, %74 : f32
    %cst_26 = arith.constant 8.000000e+00 : f32
    %76 = arith.divf %75, %cst_26 : f32
    %cst_27 = arith.constant 1.000000e+03 : f32
    %77 = arith.divf %76, %cst_27 : f32
    %cst_28 = arith.constant 2.000000e+00 : f32
    %78 = arith.divf %77, %cst_28 : f32
    %c0_29 = arith.constant 0 : index
    %c0_30 = arith.constant 0 : index
    %79 = memref.load %arg5[%c0_29, %c0_30] : memref<1x1xf32, #tpu.memory_space<smem>>
    memref.store %78, %arg5[%c0_29, %c0_30] : memref<1x1xf32, #tpu.memory_space<smem>>
    %cst_31 = arith.constant dense<0.000000e+00> : vector<16x256xf32>
    %80 = tpu.matmul %32, %66, %cst_31 {dimension_numbers = #tpu.dot_dimension_numbers<[1], [0], [0], [1], [0, 0, 1, 1], [], []>, precision = #tpu.contract_precision<fp32>} : vector<16x8xf32>, vector<8x256xf32>, vector<16x256xf32> -> vector<16x256xf32>
    %81 = vector.shape_cast %36 : vector<16x1xi1> to vector<16x1xi1>
    %82 = vector.broadcast %81 : vector<16x1xi1> to vector<16x256xi1>
    %83 = arith.select %82, %80, %2 : vector<16x256xi1>, vector<16x256xf32>
    %c0_32 = arith.constant 0 : index
    %c0_33 = arith.constant 0 : index
    %84 = vector.load %arg6[%c0_32, %c0_33] : memref<16x256xf32, #tpu.memory_space<vmem>>, vector<16x256xf32>
    tpu.vector_store %arg6[%c0_32, %c0_33], %83 {strides = array<i32>} : memref<16x256xf32, #tpu.memory_space<vmem>>, vector<16x256xf32>,
    return
  }
  func.func @transform_0(%arg0: i32) -> (i32, i32) {
    %c0_i32 = arith.constant 0 : i32
    %c0_i32_0 = arith.constant 0 : i32
    %c0_i32_1 = arith.constant 0 : i32
    return %c0_i32, %c0_i32_0 : i32, i32
  }
  func.func @transform_1(%arg0: i32) -> (i32, i32) {
    %c0_i32 = arith.constant 0 : i32
    %c0_i32_0 = arith.constant 0 : i32
    %c0_i32_1 = arith.constant 0 : i32
    return %c0_i32, %c0_i32_0 : i32, i32
  }
  func.func @transform_2(%arg0: i32) -> (i32, i32) {
    %c0_i32 = arith.constant 0 : i32
    %c0_i32_0 = arith.constant 0 : i32
    %c0_i32_1 = arith.constant 0 : i32
    return %c0_i32, %c0_i32_0 : i32, i32
  }
  func.func @transform_3(%arg0: i32) -> (i32, i32) {
    %c0_i32 = arith.constant 0 : i32
    %c0_i32_0 = arith.constant 0 : i32
    %c0_i32_1 = arith.constant 0 : i32
    return %c0_i32, %c0_i32_0 : i32, i32
  }
  func.func @transform_4(%arg0: i32) -> (i32, i32) {
    %c0_i32 = arith.constant 0 : i32
    %c0_i32_0 = arith.constant 0 : i32
    %c0_i32_1 = arith.constant 0 : i32
    return %c0_i32, %c0_i32_0 : i32, i32
  }
  func.func @transform_5(%arg0: i32) -> (i32, i32) {
    %c0_i32 = arith.constant 0 : i32
    %c0_i32_0 = arith.constant 0 : i32
    %c0_i32_1 = arith.constant 0 : i32
    return %c0_i32, %c0_i32_0 : i32, i32
  }
}

</mosaic_0001>

<bundles_post_ra>
// kernel: tpu_custom_call.1
= control target key start
LH: loop header
LB: loop body
LE: loop exit
PB: predicated region body
PF: predicated region fallthrough
CT: control target
= control target key end

     0   :  { %11 = vsyncpa [#allocation3], 0  ;;  %s2035_s0 = inlined_call_operand.vmem [shape: s32[8,1], index: 0, kind: input, shape index: {}]   ;;  %s2036_s1 = inlined_call_operand.vmem [shape: s32[1,8], index: 1, kind: input, shape index: {}]   ;;  %s2037_s2 = inlined_call_operand.vmem [shape: f32[16,256], index: 2, kind: input, shape index: {}]   ;;  %s2038_s3 = inlined_call_operand.hbm [shape: f32[16,256], index: 3, kind: input, shape index: {}, may-alias: {3,5}]   ;;  %s2039_s4 = inlined_call_operand.hbm [shape: f32[1,1], index: 4, kind: output, shape index: {0}]   ;;  %s2040_s5 = inlined_call_operand.hbm [shape: f32[16,256], index: 5, kind: output, shape index: {1}, may-alias: {3,5}]  }
   0x1   :  { %12 = vsyncpa [#allocation5], 0 }
   0x2   :  { %13 = vsyncpa [#allocation4], 0  ;;  %s1826_s18 = smov [#allocation2]   ;;  %s1766_s22 = scalar_lea.hbm %s2038_s3, 512 }
   0x3   :  { %s25_s19 = sshll.u32 %s1826_s18, 4  ;;  %p1767_p0 = scmp.ne.s32.totalorder %s2038_s3, %s1766_s22  ;;  %s26_s19 = int_to_ptr.vmem [resolvable:$true] %s25_s19 }
   0x4   :  { %p1770_p1 = scmp.lt.u32.totalorder %s1766_s22, %s2038_s3 }
   0x6   :  { %p1772_p2 = pnand %p1770_p1, %p1767_p0 }
   0x8   :  { %1775 = shalt.err (!%p1772_p2)
}
   0x9   :  { %s1776_s27 = scalar_lea.vmem %s26_s19, 512  ;;  %p1781_p4 = scmp.lt.s32.totalorder %s26_s19, %s26_s19 }
   0xa   :  { %p1777_p3 = scmp.ne.s32.totalorder %s26_s19, %s1776_s27  ;;  %p1782_p5 = scmp.lt.s32.totalorder %s1776_s27, %s1776_s27 }
   0xc   :  { %p1783_p6 = por %p1782_p5, %p1781_p4 }
   0xe   :  { %p1784_p7 = pnand %p1783_p6, %p1777_p3 }
  0x10   :  { %1787 = shalt.err (!%p1784_p7)
}
  0x11   :  { %s1827_s28 = smov 256   ;;  %s1828_s29 = smov 16  }
  0x12   :  { %31 = dma.hbm_to_vmem [thread:$0]  %s2038_s3, 512, %s26_s19, [#allocation3], %s1827_s28, %s1827_s28, %s1828_s29  }
  0x13   :  { %1820 = dma.done.wait [#allocation3], 512  }
  0x14   :  { %1821 = vsyncadd [#allocation3], 4294966784  ;;  %v1829_v0 = vmov 0   ;;  %v1830_v1 = vmov 0.0   ;;  %v35_v2 = vld [vmem:[%s2035_s0] sm:$0xff]  ;;  %v1883_v3 = vld [vmem:[#allocation2 + $0x8] sm:$0xff]  ;;  %v45_v35 = vlaneseq }
  0x15   :  { %1765 = vset.pattern.permute.xlu0 %v1829_v0  ;;  %165 = vmatprep.mubr.f32.mxu0 %v1830_v1  ;;  %v1885_v4 = vld [vmem:[#allocation2 + $0x18] sm:$0xff]  ;;  %v97_v5 = vand.u32 4294901760, %v1883_v3  ;;  %v1889_v7 = vld [vmem:[#allocation2] sm:$0xff]  ;;  %v1891_v8 = vld [vmem:[#allocation2 + $0x10] sm:$0xff]  ;;  %vm93_vm1 = vcmask 130048   ;;  %vm71_vm2 = vcmask 64512  }
  0x16   :  { %672 = vmatprep.mubr.f32.mxu1 %v1830_v1  ;;  %48 = vperm.xlu0 %1765, %v35_v2   ;;  %v101_v6 = vand.u32 4294901760, %v1885_v4  ;;  %v99_v9 = vand.u32 4294901760, %v1889_v7  ;;  %v103_v10 = vand.u32 4294901760, %v1891_v8  ;;  %v46_v36 = vand.u32 127, %v45_v35  ;;  %v1682_v38 = vld [vmem:[%s2036_s1] ss:$0 sm:$0xff] }
  0x17   :  { %v178_v12 = vsub.f32 %v1883_v3, %v97_v5  ;;  %v54_v37 = vshrl.u32 %v45_v35, 7  ;;  %vm1086_vm8 = vcmask 7168  }
  0x18   :  { %v1895_v11 = vpack.c.bf16 %v101_v6, %v97_v5  ;;  %v190_v13 = vsub.f32 %v1885_v4, %v101_v6  ;;  %v1899_v14 = vpack.c.bf16 %v103_v10, %v99_v9  ;;  %v1902_v15 = vsub.f32 %v1889_v7, %v99_v9 }
  0x19   :  { %v196_v16 = vsub.f32 %v1891_v8, %v103_v10  ;;  %v179_v17 = vand.u32 4294901760, %v178_v12  ;;  %vm69_vm0 = vcmp.gt.s32.totalorder %v54_v37, %v46_v36  ;;  %v55_v50 = vadd.s32 8, %v54_v37  ;;  %v41_v10 = vld [vmem:[%s2037_s2] sm:$0xff] }
  0x1a   :  { %1691 = vmatprep.subr.bf16.mxu0 %v1895_v11  ;;  %v191_v18 = vand.u32 4294901760, %v190_v13  ;;  %v185_v19 = vand.u32 4294901760, %v1902_v15  ;;  %v1698_v31 = vpack.c.bf16 %v190_v13, %v178_v12  ;;  %vm60_vm5 = vcmp.eq.s32.totalorder %v54_v37, %v1682_v38 }
  0x1b   :  { %1693 = vmatpush1.bf16.msra.mxu0 %v1899_v14  ;;  %v197_v20 = vand.u32 4294901760, %v196_v16  ;;  %v180_v21 = vsub.f32 %v178_v12, %v179_v17  ;;  %v1700_v32 = vpack.c.bf16 %v196_v16, %v1902_v15  ;;  %vm61_vm6 = vcmp.eq.s32.totalorder %v55_v50, %v1682_v38 }
  0x1c   :  { %v192_v22 = vsub.f32 %v190_v13, %v191_v18  ;;  %v186_v23 = vsub.f32 %v1902_v15, %v185_v19  ;;  %v1706_v33 = vpack.c.bf16 %v191_v18, %v179_v17  ;;  %v1683_v56 = vsel %vm60_vm5, 1.0, %v1830_v1 }
  0x1d   :  { %v198_v24 = vsub.f32 %v196_v16, %v197_v20  ;;  %v181_v25 = vand.u32 4294901760, %v180_v21  ;;  %v1708_v34 = vpack.c.bf16 %v197_v20, %v185_v19  ;;  %v1684_v57 = vsel %vm61_vm6, 1.0, %v1830_v1 }
  0x1e   :  { %v193_v26 = vand.u32 4294901760, %v192_v22  ;;  %v187_v27 = vand.u32 4294901760, %v186_v23  ;;  %v599_v12 = vmul.f32 1e-06, %v41_v10 }
  0x1f   :  { %v199_v28 = vand.u32 4294901760, %v198_v24 }
  0x20   :  { %v1694_v29 = vpack.c.bf16 %v193_v26, %v181_v25 }
  0x21   :  { %v1696_v30 = vpack.c.bf16 %v199_v28, %v187_v27 }
  0x22   :  { %1695 = vmatprep.subr.bf16.mxu0 %v1694_v29 }
  0x95   :  { %v49_v39 = vpop.permute.xlu0 %48 }
  0x96   :  { %vm50_vm3 = vcmp.eq.s32.totalorder %v49_v39, %v46_v36  ;;  %vm66_vm4 = vcmp.eq.s32.totalorder %v49_v39, %v1682_v38 }
  0x97   :  { %v1681_v40 = vsel %vm50_vm3, 1.0, %v1830_v1  ;;  %v1685_v41 = vsel %vm66_vm4, 1.0, %v1830_v1 }
  0x98   :  { %v70_v42 = vsel %vm69_vm0, %v1685_v41, 0.0  ;;  %v95_v43 = vsel %vm93_vm1, %v1681_v40, 0 }
  0x99   :  { %v72_v44 = vsel %vm71_vm2, %v70_v42, 0.0  ;;  %v167_v45 = vsub.f32 %v95_v43, %v95_v43  ;;  %v44_v42 = vld [vmem:[%s2037_s2 + $0x18] sm:$0xff] }
  0x9a   :  { %v73_v46 = vrot.slane %v72_v44, 4 }
  0x9b   :  { %v168_v47 = vand.u32 4294901760, %v167_v45 }
  0x9c   :  { %v74_v48 = vadd.f32 %v73_v46, %v72_v44  ;;  %v1083_v46 = vmul.f32 1e-06, %v44_v42 }
  0x9d   :  { %v169_v49 = vsub.f32 %v167_v45, %v168_v47 }
  0x9e   :  { %v75_v51 = vrot.slane %v74_v48, 2 }
  0x9f   :  { %v170_v52 = vand.u32 4294901760, %v169_v49 }
  0xa0   :  { %v76_v53 = vadd.f32 %v75_v51, %v74_v48 }
  0xa1   :  { %171 = vmatmul.mubr.f32.vlgmr.msra.gmra.mrb[0].mxu0 %v170_v52 }
  0xa2   :  { %v77_v54 = vrot.slane %v76_v53, 1  ;;  %1697 = vmatpush1.bf16.msra.mxu0 %v1696_v30  ;;  %261 = vmatprep.mubr.f32.mxu0 %v1830_v1 }
  0xa3   :  { %1699 = vmatprep.subr.bf16.mxu0 %v1698_v31 }
  0xa4   :  { %v78_v55 = vadd.f32 %v77_v54, %v76_v53 }
  0xa6   :  { %vm79_vm7 = vcmp.eq.f32.partialorder %v78_v55, 0.0 }
  0xa7   :  { %v1686_v58 = vsel %vm79_vm7, 1.0, %v1830_v1 }
  0xa8   :  { %v82_v59 = vmul.f32 %v1686_v58, %v1683_v56  ;;  %v83_v60 = vmul.f32 %v1686_v58, %v1684_v57  ;;  %v92_v2 = vmul.f32 %v1686_v58, %v1685_v41  ;;  %v43_v41 = vld [vmem:[%s2037_s2 + $0x10] sm:$0xff] }
  0xa9   :  { %1687 = vmatmul.mubr.msk.f32.vlgmr.msra.gmra.mrb[0].mxu0 %vm93_vm1, %v1681_v40  ;;  %v1082_v43 = vmul.f32 1e-06, %v43_v41 }
  0xaa   :  { %v1923_v61 = vsel %vm71_vm2, %v82_v59, 0  ;;  %1701 = vmatpush1.bf16.msra.mxu0 %v1700_v32  ;;  %341 = vmatprep.mubr.f32.mxu0 %v1830_v1  ;;  %v1927_v62 = vsel %vm71_vm2, %v83_v60, 0  ;;  %v1930_v63 = vsel %vm71_vm2, %v82_v59, 0.0  ;;  %v1934_v0 = vsel %vm71_vm2, %v83_v60, 0.0 }
  0xab   :  { %1703 = vmatprep.subr.bf16.mxu0 %v1895_v11  ;;  %v604_v5 = vsel %vm71_vm2, %v92_v2, 0  ;;  %v1959_v38 = vand.u32 4294901760, %v1923_v61  ;;  %v1962_v39 = vand.u32 4294901760, %v1927_v62 }
  0xac   :  { %v673_v6 = vand.u32 4294901760, %v604_v5 }
  0xad   :  { %v1976_v44 = vsub.f32 %v1927_v62, %v1962_v39 }
  0xae   :  { %v674_v9 = vsub.f32 %v604_v5, %v673_v6 }
  0xaf   :  { %v1205_v56 = vand.u32 4294901760, %v1976_v44 }
  0xb0   :  { %v675_v15 = vand.u32 4294901760, %v674_v9 }
  0xb1   :  { %344 = vmatmul.mubr.f32.vlgmr.msra.gmra.mrb[0].mxu0 %v167_v45 }
  0xb2   :  { %1705 = vmatpush1.bf16.msra.mxu0 %v1899_v14  ;;  %418 = vmatprep.mubr.f32.mxu0 %v1830_v1  ;;  %v676_v25 = vsub.f32 %v674_v9, %v675_v15 }
  0xb3   :  { %1707 = vmatprep.subr.bf16.mxu0 %v1706_v33 }
  0xb4   :  { %v677_v31 = vand.u32 4294901760, %v676_v25 }
  0xb9   :  { %422 = vmatmul.mubr.f32.vlgmr.msra.gmra.mrb[0].mxu0 %v168_v47 }
  0xba   :  { %1709 = vmatpush1.bf16.msra.mxu0 %v1708_v34  ;;  %504 = vmatprep.mubr.f32.mxu0 %v1830_v1 }
  0xbb   :  { %1711 = vmatprep.subr.bf16.mxu0 %v1895_v11  ;;  %v42_v11 = vld [vmem:[%s2037_s2 + $0x8] sm:$0xff]  ;;  %s1831_s2 = smov [#allocation7]  }
  0xbc   :  { %s1664_s16 = sshll.u32 %s1831_s2, 4  ;;  %s1665_s16 = int_to_ptr.vmem [resolvable:$true] %s1664_s16 }
  0xbd   :  { %s1788_s17 = scalar_lea.vmem %s1665_s16, 512  ;;  %p1793_p9 = scmp.lt.s32.totalorder %s1665_s16, %s1665_s16 }
  0xbe   :  { %p1789_p8 = scmp.ne.s32.totalorder %s1665_s16, %s1788_s17  ;;  %p1794_p10 = scmp.lt.s32.totalorder %s1788_s17, %s1788_s17 }
  0xc0   :  { %p1795_p11 = por %p1794_p10, %p1793_p9 }
  0xc1   :  { %1688 = vmatmul.mubr.msk.f32.vlgmr.msra.gmra.mrb[0].mxu0 %vm93_vm1, %v1681_v40 }
  0xc2   :  { %1713 = vmatpush1.bf16.msra.mxu0 %v1899_v14  ;;  %580 = vmatprep.mubr.f32.mxu0 %v1830_v1  ;;  %v600_v14 = vmul.f32 1e-06, %v42_v11  ;;  %p1796_p12 = pnand %p1795_p11, %p1789_p8 }
  0xc9   :  { %1689 = vmatmul.mubr.msk.f32.vlgmr.msra.gmra.mrb[0].mxu0 %vm93_vm1, %v1681_v40  ;;  %v1966_v40 = vsub.f32 %v1923_v61, %v1959_v38 }
  0xca   :  { %1191 = vmatprep.mubr.f32.mxu0 %v1830_v1 }
  0xcb   :  { %v1194_v47 = vand.u32 4294901760, %v1966_v40 }
  0xcd   :  { %v1195_v60 = vsub.f32 %v1966_v40, %v1194_v47 }
 0x19c   :  { %v583_v13 = vpop.f32.mrb[0].mxu0 }
 0x19d   :  { %v588_v16 = vsub.f32 %v41_v10, %v583_v13  ;;  %v597_v17 = vmul.f32 0.999999, %v583_v13  ;;  %v585_v18 = vpop.f32.mrb[1].mxu0  ;;  %v1196_v10 = vand.u32 4294901760, %v1195_v60 }
 0x19e   :  { %v589_v19 = vsub.f32 %v42_v11, %v585_v18  ;;  %v598_v20 = vmul.f32 0.999999, %v585_v18  ;;  %v1206_v11 = vsub.f32 %v1976_v44, %v1205_v56 }
 0x19f   :  { %v590_v21 = vmul.f32 %v588_v16, %v588_v16  ;;  %v601_v22 = vadd.f32 %v599_v12, %v597_v17 }
 0x1a0   :  { %v591_v23 = vmul.f32 %v589_v19, %v589_v19  ;;  %v602_v24 = vadd.f32 %v600_v14, %v598_v20  ;;  %v1207_v16 = vand.u32 4294901760, %v1206_v11 }
 0x1a1   :  { %v608_v26 = vand.u32 4294901760, %v601_v22 }
 0x1a2   :  { %v606_v27 = vand.u32 4294901760, %v602_v24  ;;  %v592_v28 = vadd.f32 %v591_v23, %v590_v21 }
 0x1a3   :  { %v691_v29 = vsub.f32 %v601_v22, %v608_v26 }
 0x1a4   :  { %v685_v30 = vsub.f32 %v602_v24, %v606_v27  ;;  %607 = vmatprep.subr.mxu1 %v606_v27  ;;  %593 = vadd.xlane.f32.xlu0 %v592_v28 }
 0x1a5   :  { %609 = vmatpush1.msra.mxu1 %v608_v26  ;;  %v692_v32 = vand.u32 4294901760, %v691_v29 }
 0x1a6   :  { %678 = vmatmul.mubr.f32.vlgmr.msra.gmra.mrb[0].mxu1 %v677_v31  ;;  %v686_v33 = vand.u32 4294901760, %v685_v30 }
 0x1a7   :  { %v693_v34 = vsub.f32 %v691_v29, %v692_v32  ;;  %758 = vmatprep.mubr.f32.mxu1 %v1830_v1 }
 0x1a8   :  { %v687_v35 = vsub.f32 %v685_v30, %v686_v33 }
 0x1a9   :  { %v694_v37 = vand.u32 4294901760, %v693_v34 }
 0x1aa   :  { %v688_v36 = vand.u32 4294901760, %v687_v35 }
 0x1ac   :  { %689 = vmatprep.subr.mxu1 %v688_v36 }
 0x1ad   :  { %695 = vmatpush1.msra.mxu1 %v694_v37 }
 0x1ae   :  { %760 = vmatmul.mubr.f32.vlgmr.msra.gmra.mrb[0].mxu1 %v673_v6  ;;  %768 = vmatprep.subr.mxu1 %v685_v30 }
 0x1af   :  { %771 = vmatpush1.msra.mxu1 %v691_v29  ;;  %834 = vmatprep.mubr.f32.mxu1 %v1830_v1 }
 0x1b0   :  { %844 = vmatprep.subr.mxu1 %v606_v27 }
 0x1b6   :  { %837 = vmatmul.mubr.f32.vlgmr.msra.gmra.mrb[0].mxu1 %v674_v9 }
 0x1b7   :  { %846 = vmatpush1.msra.mxu1 %v608_v26  ;;  %909 = vmatprep.mubr.f32.mxu1 %v1830_v1 }
 0x1b8   :  { %922 = vmatprep.subr.mxu1 %v686_v33 }
 0x1be   :  { %913 = vmatmul.mubr.f32.vlgmr.msra.gmra.mrb[0].mxu1 %v675_v15 }
 0x1bf   :  { %926 = vmatpush1.msra.mxu1 %v692_v32  ;;  %989 = vmatprep.mubr.f32.mxu1 %v1830_v1 }
 0x1c0   :  { %998 = vmatprep.subr.mxu1 %v606_v27 }
 0x1c6   :  { %991 = vmatmul.mubr.f32.vlgmr.msra.gmra.mrb[0].mxu1 %v673_v6 }
 0x1c7   :  { %1000 = vmatpush1.msra.mxu1 %v608_v26  ;;  %1063 = vmatprep.mubr.f32.mxu1 %v1830_v1 }
 0x1ce   :  { %1065 = vmatmul.mubr.f32.vlgmr.msra.gmra.mrb[0].mxu1 %v673_v6 }
 0x1cf   :  { %1454 = vmatprep.mubr.f32.mxu1 %v1830_v1 }
 0x231   :  { %v594_v48 = vpop.xlane.xlu0 %593 }
 0x232   :  { %v595_v57 = vmax.f32 %v594_v48, 1e-05 }
 0x234   :  { %v596_v6 = vmin.f32 %v595_v57, 100000.0 }
 0x236   :  { %v1087_v15 = vsel %vm1086_vm8, %v596_v6, 0.0 }
 0x2a1   :  { %v1066_v45 = vpop.f32.mrb[0].mxu1 }
 0x2a2   :  { %v1071_v49 = vsub.f32 %v43_v41, %v1066_v45  ;;  %v1080_v50 = vmul.f32 0.999999, %v1066_v45  ;;  %v1068_v51 = vpop.f32.mrb[1].mxu1 }
 0x2a3   :  { %v1072_v52 = vsub.f32 %v44_v42, %v1068_v51  ;;  %v1081_v53 = vmul.f32 0.999999, %v1068_v51 }
 0x2a4   :  { %v1084_v54 = vadd.f32 %v1082_v43, %v1080_v50  ;;  %v1073_v55 = vmul.f32 %v1071_v49, %v1071_v49 }
 0x2a5   :  { %v1085_v58 = vadd.f32 %v1083_v46, %v1081_v53  ;;  %v1074_v59 = vmul.f32 %v1072_v52, %v1072_v52 }
 0x2a6   :  { %v1127_v61 = vand.u32 4294901760, %v1084_v54 }
 0x2a7   :  { %v1125_v62 = vand.u32 4294901760, %v1085_v58  ;;  %v1075_v2 = vadd.f32 %v1074_v59, %v1073_v55 }
 0x2a8   :  { %v1221_v5 = vsub.f32 %v1084_v54, %v1127_v61 }
 0x2a9   :  { %v1215_v9 = vsub.f32 %v1085_v58, %v1125_v62  ;;  %1126 = vmatprep.subr.mxu0 %v1125_v62  ;;  %1389 = vmatprep.subr.mxu1 %v1125_v62 }
 0x2aa   :  { %1076 = vadd.xlane.f32.xlu1 %v1075_v2  ;;  %1128 = vmatpush1.msra.mxu0 %v1127_v61  ;;  %v1222_v12 = vand.u32 4294901760, %v1221_v5 }
 0x2ab   :  { %1391 = vmatpush1.msra.mxu1 %v1127_v61  ;;  %1197 = vmatmul.mubr.f32.vlgmr.msra.gmra.mrb[2].mxu0 %v1196_v10  ;;  %v1216_v13 = vand.u32 4294901760, %v1215_v9 }
 0x2ac   :  { %1458 = vmatmul.mubr.f32.vlgmr.msra.gmra.mrb[2].mxu1 %v1194_v47  ;;  %1202 = vmatprep.mubr.f32.mxu0 %v1830_v1  ;;  %v1223_v14 = vsub.f32 %v1221_v5, %v1222_v12 }
 0x2ad   :  { %1476 = vmatprep.subr.mxu1 %v1216_v13  ;;  %1463 = vmatprep.mubr.f32.mxu1 %v1830_v1  ;;  %v1217_v17 = vsub.f32 %v1215_v9, %v1216_v13 }
 0x2ae   :  { %1088 = vadd.xlane.f32.xlu1 %v1087_v15  ;;  %1480 = vmatpush1.msra.mxu1 %v1222_v12  ;;  %v1224_v19 = vand.u32 4294901760, %v1223_v14 }
 0x2af   :  { %1208 = vmatmul.mubr.f32.gmra.mrb[4].mxu0 %v1207_v16  ;;  %1559 = vmatprep.subr.mxu1 %v1125_v62  ;;  %v1218_v18 = vand.u32 4294901760, %v1217_v17 }
 0x2b0   :  { %1467 = vmatmul.mubr.f32.gmra.mrb[4].mxu1 %v1205_v56  ;;  %1288 = vmatprep.mubr.f32.mxu0 %v1830_v1 }
 0x2b1   :  { %1219 = vmatprep.subr.mxu0 %v1218_v18  ;;  %1543 = vmatprep.mubr.f32.mxu1 %v1830_v1 }
 0x2b2   :  { %1225 = vmatpush1.msra.mxu0 %v1224_v19 }
 0x2b3   :  { %1290 = vmatmul.mubr.f32.vlgmr.msra.gmra.mrb[2].mxu0 %v1959_v38  ;;  %1305 = vmatprep.subr.mxu0 %v1215_v9 }
 0x2b4   :  { %1545 = vmatmul.mubr.f32.vlgmr.msra.gmra.mrb[2].mxu1 %v1959_v38  ;;  %1308 = vmatpush1.msra.mxu0 %v1221_v5 }
 0x2b5   :  { %1561 = vmatpush1.msra.mxu1 %v1127_v61  ;;  %1295 = vmatprep.mubr.f32.mxu0 %v1830_v1 }
 0x2b6   :  { %1550 = vmatprep.mubr.f32.mxu1 %v1830_v1 }
 0x2b7   :  { %1297 = vmatmul.mubr.f32.gmra.mrb[4].mxu0 %v1962_v39 }
 0x2b8   :  { %1552 = vmatmul.mubr.f32.gmra.mrb[4].mxu1 %v1962_v39  ;;  %1371 = vmatprep.mubr.f32.mxu0 %v1830_v1 }
 0x2b9   :  { %1624 = vmatprep.mubr.f32.mxu1 %v1830_v1 }
 0x2bb   :  { %1374 = vmatmul.mubr.f32.vlgmr.msra.gmra.mrb[2].mxu0 %v1966_v40 }
 0x2bc   :  { %1626 = vmatmul.mubr.f32.vlgmr.msra.gmra.mrb[2].mxu1 %v1959_v38  ;;  %1379 = vmatprep.mubr.f32.mxu0 %v1830_v1 }
 0x2bd   :  { %1631 = vmatprep.mubr.f32.mxu1 %v1830_v1 }
 0x2bf   :  { %1382 = vmatmul.mubr.f32.gmra.mrb[4].mxu0 %v1976_v44 }
 0x2c0   :  { %1633 = vmatmul.mubr.f32.gmra.mrb[4].mxu1 %v1962_v39 }
 0x337   :  { %v1077_v20 = vpop.xlane.xlu1 %1076 }
 0x338   :  { %v1078_v21 = vmax.f32 %v1077_v20, 1e-05 }
 0x33a   :  { %v1079_v22 = vmin.f32 %v1078_v21, 100000.0 }
 0x33b   :  { %v1089_v23 = vpop.xlane.xlu1 %1088 }
 0x33c   :  { %v1090_v24 = vrot.slane %v1089_v23, 4  ;;  %v1097_v25 = vsel %vm1086_vm8, %v1079_v22, 0.0 }
 0x33d   :  { %1098 = vadd.xlane.f32.xlu1 %v1097_v25 }
 0x33e   :  { %v1091_v26 = vadd.f32 %v1090_v24, %v1089_v23 }
 0x340   :  { %v1092_v27 = vrot.slane %v1091_v26, 2 }
 0x341   :  { %85 = vadd.xlane.f32.xlu1 %v1930_v63 }
 0x342   :  { %v1093_v28 = vadd.f32 %v1092_v27, %v1091_v26 }
 0x344   :  { %v1094_v29 = vrot.slane %v1093_v28, 1 }
 0x345   :  { %88 = vadd.xlane.f32.xlu1 %v1934_v0 }
 0x346   :  { %v1095_v1 = vadd.f32 %v1094_v29, %v1093_v28 }
 0x348   :  { %1754 = vpush %v1095_v1 }
 0x38e   :  { %v1375_v30 = vpop.f32.mrb[2].mxu0 }
 0x38f   :  { %v1627_v31 = vpop.f32.mrb[2].mxu1  ;;  %v1377_v32 = vpop.f32.mrb[3].mxu0 }
 0x390   :  { %v1714_v33 = vadd.f32 %v1627_v31, %v1375_v30  ;;  %v1629_v34 = vpop.f32.mrb[3].mxu1 }
 0x391   :  { %v1715_v35 = vadd.f32 %v1629_v34, %v1377_v32 }
 0x392   :  { %v1383_v36 = vpop.f32.mrb[4].mxu0 }
 0x393   :  { %v1634_v37 = vpop.f32.mrb[4].mxu1  ;;  %v1385_v38 = vpop.f32.mrb[5].mxu0 }
 0x394   :  { %v1716_v39 = vadd.f32 %v1634_v37, %v1383_v36  ;;  %v1636_v40 = vpop.f32.mrb[5].mxu1 }
 0x395   :  { %v1717_v41 = vadd.f32 %v1636_v40, %v1385_v38 }
 0x3ca   :  { %v1099_v42 = vpop.xlane.xlu1 %1098 }
 0x3cb   :  { %v1100_v63 = vrot.slane %v1099_v42, 4 }
 0x3cd   :  { %v1101_v43 = vadd.f32 %v1100_v63, %v1099_v42 }
 0x3ce   :  { %v86_v44 = vpop.xlane.xlu1 %85 }
 0x3cf   :  { %v1102_v45 = vrot.slane %v1101_v43, 2  ;;  %vm90_vm9 = vcmp.gt.f32.partialorder %v86_v44, 0.5 }
 0x3d0   :  { %v1643_v0 = vsel %vm90_vm9, %v1714_v33, %v1889_v7  ;;  %v1644_v46 = vsel %vm90_vm9, %v1715_v35, %v1883_v3 }
 0x3d1   :  { %1647 = vst [vmem:[#allocation7] sm:$0xff] %v1643_v0  ;;  %1648 = vst [vmem:[#allocation7 + $0x8] sm:$0xff] %v1644_v46  ;;  %v1103_v47 = vadd.f32 %v1102_v45, %v1101_v43 }
 0x3d2   :  { %v89_v48 = vpop.xlane.xlu1 %88 }
 0x3d3   :  { %vm91_vm10 = vcmp.gt.f32.partialorder %v89_v48, 0.5  ;;  %v1104_v49 = vrot.slane %v1103_v47, 1 }
 0x3d4   :  { %v1645_v50 = vsel %vm91_vm10, %v1716_v39, %v1891_v8  ;;  %v1646_v51 = vsel %vm91_vm10, %v1717_v41, %v1885_v4 }
 0x3d5   :  { %1649 = vst [vmem:[#allocation7 + $0x10] sm:$0xff] %v1645_v50  ;;  %1650 = vst [vmem:[#allocation7 + $0x18] sm:$0xff] %v1646_v51  ;;  %v1105_v52 = vadd.f32 %v1104_v49, %v1103_v47 }
 0x3d6   :  { %1799 = shalt.err (!%p1796_p12)
}
 0x3d7   :  { %s1800_s20 = scalar_lea.hbm %s2040_s5, 512 }
 0x3d8   :  { %p1801_p13 = scmp.ne.s32.totalorder %s2040_s5, %s1800_s20  ;;  %p1804_p0 = scmp.lt.u32.totalorder %s1800_s20, %s2040_s5 }
 0x3da   :  { %p1806_p1 = pnand %p1804_p0, %p1801_p13 }
 0x3dc   :  { %1809 = shalt.err (!%p1806_p1)
}
 0x3dd   :  { %1670 = dma.vmem_to_hbm [thread:$0]  %s1665_s16, 512, %s2040_s5, [#allocation4], %s1827_s28, %s1827_s28, %s1828_s29   ;;  %1756 = vpush %v1105_v52 }
 0x3de   :  { %s1755_s27 = spop %1754  ;;  %s1810_s9 = scalar_lea.hbm %s2039_s4, 16 }
 0x3df   :  { %p1811_p2 = scmp.ne.s32.totalorder %s2039_s4, %s1810_s9  ;;  %p1814_p3 = scmp.lt.u32.totalorder %s1810_s9, %s2039_s4 }
 0x3e1   :  { %p1816_p4 = pnand %p1814_p3, %p1811_p2 }
 0x40e   :  { %s1757_s30 = spop %1756 }
 0x40f   :  { %s1107_s6 = sadd.f32 %s1757_s30, %s1755_s27 }
 0x411   :  { %s1110_s7 = smul.f32 0.125, %s1107_s6 }
 0x413   :  { %s1113_s8 = smul.f32 0.001, %s1110_s7 }
 0x415   :  { %s1116_s0 = smul.f32 0.5, %s1113_s8 }
 0x417   :  { %1118 = sst [smem:[#allocation6]] %s1116_s0 }
 0x418   :  { %1819 = shalt.err (!%p1816_p4)
}
 0x419   :  { %s1832_s5 = smov [#allocation6]  }
 0x41a   :  { %1658 = dma.smem_to_hbm %s1832_s5, 16, %s2039_s4, [#allocation5]  }
 0x41b   :  { %1822 = dma.done.wait [#allocation5], 16  }
 0x41c   :  { %1823 = vsyncadd [#allocation5], 4294967280 }
 0x41d   :  { %1824 = dma.done.wait [#allocation4], 512  }
 0x41e   :  { %1825 = vsyncadd [#allocation4], 4294966784 }
 0x41f   :  { %1677 = sfence }
 0x420   :  { %1678 = vsyncpa [#allocation3], 1 }
 0x421   :  { %1679 = vsyncpa [#allocation4], 1 }
 0x422   :  { %1680 = vsyncpa [#allocation5], 1 }

</bundles_post_ra>
